<compile_context>
chip_gen: v6e
topology: v6e:2x2x1
jax: 0.10.0
libtpu: 0.0.40
codegen_flags: <defaults>
</compile_context>

<pallas_src>
import functools

import jax
import jax.numpy as jnp
from jax.experimental import pallas as pl
from jax.experimental.pallas import tpu as pltpu

# Python float => becomes a jaxpr literal, NOT a captured constant.
# Acts as -inf for f32 exp-underflow purposes (any real logit >> -5e29).
NEG_BIG = -1e30


def _round_up(x: int, m: int) -> int:
    return ((x + m - 1) // m) * m


def _alt_loss_kernel(scores_ref, mask_ref, out_ref, *, normalize, scale):
    i = pl.program_id(0)

    @pl.when(i == 0)
    def _init():
        out_ref[...] = jnp.zeros_like(out_ref)

    s = scores_ref[...].astype(jnp.float32)          # (TB, Cp)
    m = mask_ref[...] != 0                           # (TB, Cp) bool (int8 input)

    if normalize:
        s = s * scale                                # python-float literal

    # ---- logsumexp over negatives (positives -> sentinel; padding already NEG_BIG)
    neg = jnp.where(m, NEG_BIG, s)                   # (TB, Cp)
    neg_max = jnp.max(neg, axis=-1, keepdims=True)   # (TB, 1)
    safe_max = jnp.where(neg_max > 0.5 * NEG_BIG, neg_max, 0.0)
    sum_exp = jnp.sum(jnp.exp(neg - safe_max), axis=-1, keepdims=True)
    has_neg = sum_exp > 0.0
    # Rows with no real negatives get lse = NEG_BIG -> softplus contribution 0,
    # matching logsumexp == -inf in the reference (and avoiding log(0)/inf math).
    lse = jnp.where(has_neg,
                    safe_max + jnp.log(jnp.where(has_neg, sum_exp, 1.0)),
                    NEG_BIG)                         # (TB, 1)

    # ---- per-positive loss: logaddexp(s, lse) - s == softplus(lse - s)
    x = lse - s                                      # implicit broadcast (TB, Cp)
    sp = jnp.maximum(x, 0.0) + jnp.log(1.0 + jnp.exp(-jnp.abs(x)))
    row_loss = jnp.sum(jnp.where(m, sp, 0.0), axis=-1, keepdims=True)   # (TB, 1)
    tile_loss = jnp.sum(row_loss, axis=0, keepdims=True)                # (1, 1)

    # Accumulate into the resident (1,1) output block (single HBM writeback).
    out_ref[...] += tile_loss


def alt_loss(scores, labels, normalize=True, scale=20.0):
    """scores: (B, C) float, labels: (B, C) {0,1}. Returns scalar f32 loss."""
    scores = jnp.asarray(scores)
    labels = jnp.asarray(labels)
    B, C = scores.shape

    # Lane-dense candidate dim; row-tile multiple of 32 (int8 sublane packing).
    c_pad = _round_up(max(C, 1), 128)
    itemsize = scores.dtype.itemsize
    # Keep 2 inputs x 2 pipeline buffers comfortably inside scoped VMEM.
    bytes_per_row = c_pad * (itemsize + 1) * 2
    tb_cap = max(32, ((8 * 1024 * 1024) // bytes_per_row) // 32 * 32)
    tb = min(512, tb_cap, _round_up(B, 32))
    b_pad = _round_up(B, tb)
    num_tiles = b_pad // tb

    mask_i8 = (labels != 0).astype(jnp.int8)
    if (b_pad, c_pad) != (B, C):
        # Padding: score -> NEG_BIG (underflows out of the negative logsumexp),
        # mask -> 0 (excluded from the positive sums).  Padded rows contribute 0.
        scores = jnp.pad(scores, ((0, b_pad - B), (0, c_pad - C)),
                         constant_values=NEG_BIG)
        mask_i8 = jnp.pad(mask_i8, ((0, b_pad - B), (0, c_pad - C)),
                          constant_values=0)

    kernel = functools.partial(_alt_loss_kernel,
                               normalize=bool(normalize),
                               scale=float(scale))

    # TODO(synk): for v7x megacore, emit per-tile partials with a "parallel"
    # batch axis instead of the single accumulator block.
    out = pl.pallas_call(
        kernel,
        out_shape=jax.ShapeDtypeStruct((1, 1), jnp.float32),
        grid_spec=pltpu.PrefetchScalarGridSpec(
            num_scalar_prefetch=0,
            grid=(num_tiles,),
            in_specs=[
                pl.BlockSpec((tb, c_pad), lambda i: (i, 0)),
                pl.BlockSpec((tb, c_pad), lambda i: (i, 0)),
            ],
            out_specs=pl.BlockSpec((1, 1), lambda i: (0, 0)),
        ),
        compiler_params=pltpu.CompilerParams(
            dimension_semantics=("arbitrary",)),
        cost_estimate=pl.CostEstimate(
            flops=int(12 * b_pad * c_pad),
            transcendentals=int(2 * b_pad * c_pad),
            bytes_accessed=int(b_pad * c_pad * (itemsize + 1) + 4)),
    )(scores, mask_i8)
    return out[0, 0]


def _alt_loss_ref(scores, labels, normalize=True, scale=20.0):
    """Pure-JAX reference mirroring the PyTorch code."""
    s = scores.astype(jnp.float32)
    if normalize:
        s = s * scale
    m = labels.astype(bool)
    gold_sum = jnp.sum(jnp.where(m, s, 0.0), axis=-1)
    neg = jnp.where(m, -jnp.inf, s)
    lse = jax.scipy.special.logsumexp(neg, axis=-1, keepdims=True)
    norm_term = jnp.sum(jnp.where(m, jnp.logaddexp(s, lse), 0.0), axis=-1)
    return -jnp.sum(gold_sum - norm_term)


if __name__ == "__main__":
    key = jax.random.PRNGKey(0)
    k1, k2 = jax.random.split(key)
    B, C = 8, 16  # batch x candidates
    scores = jax.random.normal(k1, (B, C), dtype=jnp.float32)
    # labels: ensure each row has at least one positive and one negative
    labels = (jax.random.uniform(k2, (B, C)) > 0.7).astype(jnp.int32)
    labels = labels.at[:, 0].set(1)   # guarantee a positive
    labels = labels.at[:, 1].set(0)   # guarantee a negative

    loss = alt_loss(scores, labels, normalize=True, scale=20.0)
    jax.block_until_ready(loss)

    ref = _alt_loss_ref(scores, labels, normalize=True, scale=20.0)
    assert jnp.allclose(loss, ref, rtol=1e-4, atol=1e-3), (loss, ref)
    print("KERNEL_OK")
</pallas_src>

<mosaic_0001>
module attributes {stable_mosaic.version = 11 : i64} {
  func.func @_alt_loss_kernel(%arg0: i32, %arg1: memref<32x128xf32, #tpu.memory_space<vmem>>, %arg2: memref<32x128xi8, #tpu.memory_space<vmem>>, %arg3: memref<1x1xf32, #tpu.memory_space<vmem>>) attributes {dimension_semantics = [#tpu.dimension_semantics<arbitrary>], iteration_bounds = array<i64: 1>, scalar_prefetch = 0 : i64, scratch_operands = 0 : i64, tpu.core_type = #tpu.core_type<tc>, window_params = [{transform_indices = @transform_0, window_bounds = array<i64: 32, 128>}, {transform_indices = @transform_1, window_bounds = array<i64: 32, 128>}, {pipeline_mode = #tpu.pipeline_mode<synchronous>, transform_indices = @transform_2, window_bounds = array<i64: 1, 1>}]} {
    %c0_i32 = arith.constant 0 : i32
    %0 = arith.cmpi eq, %arg0, %c0_i32 : i32
    %1 = arith.extui %0 : i1 to i32
    %c0_i32_0 = arith.constant 0 : i32
    %2 = arith.cmpi ne, %1, %c0_i32_0 : i32
    scf.if %2 {
      %cst_22 = arith.constant 0.000000e+00 : f32
      %51 = vector.broadcast %cst_22 : f32 to vector<1x1xf32>
      %c0_23 = arith.constant 0 : index
      %c0_24 = arith.constant 0 : index
      %52 = vector.load %arg3[%c0_23, %c0_24] : memref<1x1xf32, #tpu.memory_space<vmem>>, vector<1x1xf32>
      tpu.vector_store %arg3[%c0_23, %c0_24], %51 {strides = array<i32>} : memref<1x1xf32, #tpu.memory_space<vmem>>, vector<1x1xf32>,
    } else {
    }
    %c0 = arith.constant 0 : index
    %c0_1 = arith.constant 0 : index
    %3 = vector.load %arg1[%c0, %c0_1] : memref<32x128xf32, #tpu.memory_space<vmem>>, vector<32x128xf32>
    %c0_2 = arith.constant 0 : index
    %c0_3 = arith.constant 0 : index
    %4 = vector.load %arg2[%c0_2, %c0_3] : memref<32x128xi8, #tpu.memory_space<vmem>>, vector<32x128xi8>
    %c0_i8 = arith.constant 0 : i8
    %5 = vector.broadcast %c0_i8 : i8 to vector<32x128xi8>
    %6 = arith.cmpi ne, %4, %5 : vector<32x128xi8>
    %cst = arith.constant 2.000000e+01 : f32
    %7 = vector.broadcast %cst : f32 to vector<32x128xf32>
    %8 = arith.mulf %3, %7 : vector<32x128xf32>
    %cst_4 = arith.constant -1.000000e+30 : f32
    %9 = vector.broadcast %cst_4 : f32 to vector<32x128xf32>
    %10 = arith.select %6, %9, %8 : vector<32x128xi1>, vector<32x128xf32>
    %cst_5 = arith.constant dense<0xFF800000> : vector<32xf32>
    %11 = vector.multi_reduction <maximumf>, %10, %cst_5 [1] : vector<32x128xf32> to vector<32xf32>
    %12 = vector.shape_cast %11 : vector<32xf32> to vector<32x1xf32>
    %cst_6 = arith.constant -5.000000e+29 : f32
    %13 = vector.broadcast %cst_6 : f32 to vector<32x1xf32>
    %14 = arith.cmpf ogt, %12, %13 : vector<32x1xf32>
    %cst_7 = arith.constant 0.000000e+00 : f32
    %15 = vector.broadcast %cst_7 : f32 to vector<32x1xf32>
    %16 = arith.select %14, %12, %15 : vector<32x1xi1>, vector<32x1xf32>
    %17 = vector.broadcast %16 : vector<32x1xf32> to vector<32x128xf32>
    %18 = arith.subf %10, %17 : vector<32x128xf32>
    %19 = math.exp %18 : vector<32x128xf32>
    %cst_8 = arith.constant dense<0.000000e+00> : vector<32xf32>
    %20 = vector.multi_reduction <add>, %19, %cst_8 [1] : vector<32x128xf32> to vector<32xf32>
    %21 = vector.shape_cast %20 : vector<32xf32> to vector<32x1xf32>
    %cst_9 = arith.constant 0.000000e+00 : f32
    %22 = vector.broadcast %cst_9 : f32 to vector<32x1xf32>
    %23 = arith.cmpf ogt, %21, %22 : vector<32x1xf32>
    %cst_10 = arith.constant 1.000000e+00 : f32
    %24 = vector.broadcast %cst_10 : f32 to vector<32x1xf32>
    %25 = arith.select %23, %21, %24 : vector<32x1xi1>, vector<32x1xf32>
    %26 = math.log %25 : vector<32x1xf32>
    %27 = arith.addf %16, %26 : vector<32x1xf32>
    %cst_11 = arith.constant -1.000000e+30 : f32
    %28 = vector.broadcast %cst_11 : f32 to vector<32x1xf32>
    %29 = arith.select %23, %27, %28 : vector<32x1xi1>, vector<32x1xf32>
    %30 = vector.broadcast %29 : vector<32x1xf32> to vector<32x128xf32>
    %31 = arith.subf %30, %8 : vector<32x128xf32>
    %cst_12 = arith.constant 0.000000e+00 : f32
    %32 = vector.broadcast %cst_12 : f32 to vector<32x128xf32>
    %33 = arith.maximumf %31, %32 : vector<32x128xf32>
    %34 = math.absf %31 : vector<32x128xf32>
    %cst_13 = arith.constant 0.000000e+00 : f32
    %35 = vector.broadcast %cst_13 : f32 to vector<32x128xf32>
    %36 = arith.subf %35, %34 : vector<32x128xf32>
    %37 = math.exp %36 : vector<32x128xf32>
    %cst_14 = arith.constant 1.000000e+00 : f32
    %38 = vector.broadcast %cst_14 : f32 to vector<32x128xf32>
    %39 = arith.addf %38, %37 : vector<32x128xf32>
    %40 = math.log %39 : vector<32x128xf32>
    %41 = arith.addf %33, %40 : vector<32x128xf32>
    %cst_15 = arith.constant 0.000000e+00 : f32
    %42 = vector.broadcast %cst_15 : f32 to vector<32x128xf32>
    %43 = arith.select %6, %41, %42 : vector<32x128xi1>, vector<32x128xf32>
    %cst_16 = arith.constant dense<0.000000e+00> : vector<32xf32>
    %44 = vector.multi_reduction <add>, %43, %cst_16 [1] : vector<32x128xf32> to vector<32xf32>
    %45 = vector.shape_cast %44 : vector<32xf32> to vector<32x1xf32>
    %cst_17 = arith.constant dense<0.000000e+00> : vector<1xf32>
    %46 = vector.multi_reduction <add>, %45, %cst_17 [0] : vector<32x1xf32> to vector<1xf32>
    %47 = vector.shape_cast %46 : vector<1xf32> to vector<1x1xf32>
    %c0_18 = arith.constant 0 : index
    %c0_19 = arith.constant 0 : index
    %48 = vector.load %arg3[%c0_18, %c0_19] : memref<1x1xf32, #tpu.memory_space<vmem>>, vector<1x1xf32>
    %49 = arith.addf %48, %47 : vector<1x1xf32>
    %c0_20 = arith.constant 0 : index
    %c0_21 = arith.constant 0 : index
    %50 = vector.load %arg3[%c0_20, %c0_21] : memref<1x1xf32, #tpu.memory_space<vmem>>, vector<1x1xf32>
    tpu.vector_store %arg3[%c0_20, %c0_21], %49 {strides = array<i32>} : memref<1x1xf32, #tpu.memory_space<vmem>>, vector<1x1xf32>,
    return
  }
  func.func @transform_0(%arg0: i32) -> (i32, i32) {
    %c0_i32 = arith.constant 0 : i32
    %c0_i32_0 = arith.constant 0 : i32
    return %arg0, %c0_i32 : i32, i32
  }
  func.func @transform_1(%arg0: i32) -> (i32, i32) {
    %c0_i32 = arith.constant 0 : i32
    %c0_i32_0 = arith.constant 0 : i32
    return %arg0, %c0_i32 : i32, i32
  }
  func.func @transform_2(%arg0: i32) -> (i32, i32) {
    %c0_i32 = arith.constant 0 : i32
    %c0_i32_0 = arith.constant 0 : i32
    %c0_i32_1 = arith.constant 0 : i32
    return %c0_i32, %c0_i32_0 : i32, i32
  }
}

</mosaic_0001>

<bundles_post_ra>
// kernel: tpu_custom_call.1
= control target key start
LH: loop header
LB: loop body
LE: loop exit
PB: predicated region body
PF: predicated region fallthrough
CT: control target
= control target key end

     0   :  { %7 = vsyncpa [#allocation3], 0  ;;  %s424_s0 = inlined_call_operand.hbm [shape: f32[32,128], index: 0, kind: input, shape index: {}]   ;;  %s425_s1 = inlined_call_operand.hbm [shape: s8[32,128], index: 1, kind: input, shape index: {}]   ;;  %s426_s2 = inlined_call_operand.hbm [shape: f32[1,1], index: 2, kind: output, shape index: {}]  }
   0x1   :  { %8 = vsyncpa [#allocation6], 0 }
   0x2   :  { %9 = vsyncpa [#allocation4], 0  ;;  %s335_s9 = smov [#allocation2]  }
   0x3   :  { %s15_s10 = sshll.u32 %s335_s9, 4  ;;  %s16_s10 = int_to_ptr.vmem [resolvable:$true] %s15_s10 }
   0x4   :  { %s277_s11 = scalar_lea.vmem %s16_s10, 512  ;;  %p282_p1 = scmp.lt.s32.totalorder %s16_s10, %s16_s10 }
   0x5   :  { %p278_p0 = scmp.ne.s32.totalorder %s16_s10, %s277_s11  ;;  %p283_p2 = scmp.lt.s32.totalorder %s277_s11, %s277_s11 }
   0x7   :  { %p284_p3 = por %p283_p2, %p282_p1 }
   0x9   :  { %p285_p4 = pnand %p284_p3, %p278_p0 }
   0xb   :  { %288 = shalt.err (!%p285_p4)
}
   0xc   :  { %s336_s12 = smov 128   ;;  %s337_s13 = smov 8  }
   0xd   :  { %21 = dma.hbm_to_vmem [thread:$0]  %s424_s0, 512, %s16_s10, [#allocation3], %s336_s12, %s336_s12, %s337_s13  }
   0xe   :  { %s338_s16 = smov [#allocation5]  }
   0xf   :  { %s28_s17 = sshll.u32 %s338_s16, 4  ;;  %s29_s17 = int_to_ptr.vmem [resolvable:$true] %s28_s17 }
  0x10   :  { %s297_s18 = scalar_lea.vmem %s29_s17, 128  ;;  %p302_p6 = scmp.lt.s32.totalorder %s29_s17, %s29_s17 }
  0x11   :  { %p298_p5 = scmp.ne.s32.totalorder %s29_s17, %s297_s18  ;;  %p303_p7 = scmp.lt.s32.totalorder %s297_s18, %s297_s18 }
  0x13   :  { %p304_p8 = por %p303_p7, %p302_p6 }
  0x15   :  { %p305_p9 = pnand %p304_p8, %p298_p5 }
  0x17   :  { %308 = shalt.err (!%p305_p9)
}
  0x18   :  { %31 = dma.hbm_to_vmem [thread:$0]  %s425_s1, 128, %s29_s17, [#allocation6]  }
  0x19   :  { %329 = dma.done.wait [#allocation3], 512  }
  0x1a   :  { %330 = vsyncadd [#allocation3], 4294966784 }
  0x1b   :  { %331 = dma.done.wait [#allocation6], 128  }
  0x1c   :  { %332 = vsyncadd [#allocation6], 4294967168  ;;  %v50_v0 = vld [vmem:[#allocation5] sm:$0xff]  ;;  %v339_v1 = vmov 0   ;;  %v48_v9 = vld [vmem:[#allocation2 + $0x10] sm:$0xff]  ;;  %s341_s0 = smov [#allocation7]  }
  0x1d   :  { %vm51_vm0 = vnez %v50_v0  ;;  %v46_v7 = vld [vmem:[#allocation2] sm:$0xff]  ;;  %v365_v18 = vmul.f32 20.0, %v48_v9  ;;  %v47_v19 = vld [vmem:[#allocation2 + $0x8] sm:$0xff]  ;;  %v49_v20 = vld [vmem:[#allocation2 + $0x18] sm:$0xff]  ;;  %s220_s1 = sshll.u32 %s341_s0, 4  ;;  %s221_s1 = int_to_ptr.vmem [resolvable:$true] %s220_s1 }
  0x1e   :  { %v56_v2 = vsel %vm51_vm0, 16843009, %v339_v1  ;;  %v363_v17 = vmul.f32 20.0, %v46_v7  ;;  %v367_v28 = vmul.f32 20.0, %v47_v19  ;;  %v369_v29 = vmul.f32 20.0, %v49_v20  ;;  %s309_s21 = scalar_lea.vmem %s221_s1, 16  ;;  %p314_p11 = scmp.lt.s32.totalorder %s221_s1, %s221_s1 }
  0x1f   :  { %v57_v3 = vunpack.c.0.s8 %v56_v2  ;;  %v59_v4 = vunpack.c.2.s8 %v56_v2  ;;  %v58_v5 = vunpack.c.1.s8 %v56_v2  ;;  %v60_v6 = vunpack.c.3.s8 %v56_v2  ;;  %p310_p10 = scmp.ne.s32.totalorder %s221_s1, %s309_s21  ;;  %s313_s22 = scalar_lea.vmem %s221_s1, 32 }
  0x20   :  { %p315_p12 = scmp.lt.s32.totalorder %s313_s22, %s309_s21 }
  0x21   :  { %v61_v8 = vpack.c.b16 %v57_v3, %v57_v3  ;;  %v65_v10 = vpack.c.b16 %v59_v4, %v59_v4  ;;  %v63_v11 = vpack.c.b16 %v58_v5, %v58_v5  ;;  %v67_v12 = vpack.c.b16 %v60_v6, %v60_v6 }
  0x22   :  { %p316_p13 = por %p315_p12, %p314_p11 }
  0x23   :  { %v62_v13 = vpack.c.b8 %v61_v8, %v61_v8  ;;  %v66_v14 = vpack.c.b8 %v65_v10, %v65_v10  ;;  %v64_v15 = vpack.c.b8 %v63_v11, %v63_v11  ;;  %v68_v16 = vpack.c.b8 %v67_v12, %v67_v12 }
  0x24   :  { %p317_p0 = pnand %p316_p13, %p310_p10 }
  0x25   :  { %vm69_vm1 = vnez %v62_v13  ;;  %vm71_vm2 = vnez %v66_v14  ;;  %vm70_vm3 = vnez %v64_v15  ;;  %vm72_vm4 = vnez %v68_v16 }
  0x26   :  { %v73_v21 = vsel %vm69_vm1, 16843009, %v339_v1  ;;  %v75_v22 = vsel %vm71_vm2, 16843009, %v339_v1  ;;  %v74_v23 = vsel %vm70_vm3, 16843009, %v339_v1 }
  0x27   :  { %v77_v24 = vunpack.c.0.s8 %v73_v21  ;;  %v79_v25 = vunpack.c.0.s8 %v75_v22  ;;  %v78_v26 = vunpack.c.0.s8 %v74_v23  ;;  %v76_v27 = vsel %vm72_vm4, 16843009, %v339_v1 }
  0x28   :  { %v80_v30 = vunpack.c.0.s8 %v76_v27  ;;  %vm44_vm1 = vcmask 0  }
  0x29   :  { %vm371_vm5 = vcmp.ne.s32.totalorder %v77_v24, 0  ;;  %vm375_vm6 = vcmp.ne.s32.totalorder %v79_v25, 0  ;;  %vm379_vm7 = vcmp.ne.s32.totalorder %v78_v26, 0 }
  0x2a   :  { %v85_v34 = vsel %vm371_vm5, -1e+30, %v363_v17  ;;  %v87_v35 = vsel %vm375_vm6, -1e+30, %v365_v18  ;;  %vm389_vm8 = vcmp.ne.s32.totalorder %v80_v30, 0 }
  0x2b   :  { %89 = vmax.xlane.f32.xlu0 %v85_v34  ;;  %93 = vmax.xlane.f32.xlu1 %v87_v35  ;;  %v86_v37 = vsel %vm379_vm7, -1e+30, %v367_v28  ;;  %v88_v38 = vsel %vm389_vm8, -1e+30, %v369_v29 }
  0x2f   :  { %91 = vmax.xlane.f32.xlu0 %v86_v37  ;;  %95 = vmax.xlane.f32.xlu1 %v88_v38 }
  0xb4   :  { %v90_v39 = vpop.xlane.xlu0 %89  ;;  %v94_v40 = vpop.xlane.xlu1 %93 }
  0xb5   :  { %vm97_vm9 = vcmp.gt.f32.partialorder %v90_v39, -5e+29  ;;  %vm99_vm10 = vcmp.gt.f32.partialorder %v94_v40, -5e+29 }
  0xb6   :  { %v101_v41 = vsel %vm97_vm9, %v90_v39, 0.0  ;;  %v103_v42 = vsel %vm99_vm10, %v94_v40, 0.0 }
  0xb7   :  { %v105_v43 = vsub.f32 %v85_v34, %v101_v41  ;;  %v107_v44 = vsub.f32 %v87_v35, %v103_v42 }
  0xb8   :  { %v92_v45 = vpop.xlane.xlu0 %91  ;;  %v96_v46 = vpop.xlane.xlu1 %95 }
  0xb9   :  { %v109_v47 = vmul.f32 1.442695, %v105_v43  ;;  %v113_v48 = vmul.f32 1.442695, %v107_v44  ;;  %vm98_vm11 = vcmp.gt.f32.partialorder %v92_v45, -5e+29 }
  0xba   :  { %v102_v49 = vsel %vm98_vm11, %v92_v45, 0.0  ;;  %vm100_vm12 = vcmp.gt.f32.partialorder %v96_v46, -5e+29 }
  0xbb   :  { %237 = vpow2.f32 %v109_v47  ;;  %v106_v50 = vsub.f32 %v86_v37, %v102_v49  ;;  %v104_v51 = vsel %vm100_vm12, %v96_v46, 0.0 }
  0xbc   :  { %v108_v52 = vsub.f32 %v88_v38, %v104_v51  ;;  %239 = vpow2.f32 %v113_v48 }
  0xbd   :  { %v111_v53 = vmul.f32 1.442695, %v106_v50 }
  0xbe   :  { %v115_v54 = vmul.f32 1.442695, %v108_v52 }
  0xbf   :  { %241 = vpow2.f32 %v111_v53 }
  0xc0   :  { %243 = vpow2.f32 %v115_v54 }
  0xc8   :  { %v238_v55 = vpop.eup %237 }
  0xc9   :  { %117 = vadd.xlane.f32.xlu0 %v238_v55  ;;  %v240_v56 = vpop.eup %239 }
  0xcc   :  { %v242_v57 = vpop.eup %241 }
  0xcd   :  { %121 = vadd.xlane.f32.xlu0 %v240_v56  ;;  %119 = vadd.xlane.f32.xlu1 %v242_v57  ;;  %v244_v58 = vpop.eup %243 }
  0xd1   :  { %123 = vadd.xlane.f32.xlu1 %v244_v58 }
 0x152   :  { %v118_v59 = vpop.xlane.xlu0 %117 }
 0x153   :  { %vm125_vm13 = vcmp.gt.f32.partialorder %v118_v59, 0.0 }
 0x154   :  { %v129_v60 = vsel %vm125_vm13, %v118_v59, 1.0 }
 0x155   :  { %245 = vlog2.f32 %v129_v60 }
 0x156   :  { %v120_v61 = vpop.xlane.xlu1 %119  ;;  %v122_v62 = vpop.xlane.xlu0 %121 }
 0x157   :  { %vm126_vm14 = vcmp.gt.f32.partialorder %v120_v61, 0.0  ;;  %vm127_vm15 = vcmp.gt.f32.partialorder %v122_v62, 0.0 }
 0x158   :  { %v130_v63 = vsel %vm126_vm14, %v120_v61, 1.0  ;;  %v131_v0 = vsel %vm127_vm15, %v122_v62, 1.0 }
 0x159   :  { %247 = vlog2.f32 %v130_v63 }
 0x15a   :  { %249 = vlog2.f32 %v131_v0  ;;  %v124_v1 = vpop.xlane.xlu1 %123 }
 0x15b   :  { %vm128_vm0 = vcmp.gt.f32.partialorder %v124_v1, 0.0 }
 0x15c   :  { %v132_v2 = vsel %vm128_vm0, %v124_v1, 1.0 }
 0x15d   :  { %251 = vlog2.f32 %v132_v2  ;;  %v340_v2 = vmov 0.0  }
 0x15e   :  { %45 = vst.msk [vmem:[#allocation7] sm:$0x1] %vm44_vm1, %v340_v2 }
 0x162   :  { %v246_v3 = vpop.eup %245 }
 0x163   :  { %v134_v4 = vmul.f32 0.6931472, %v246_v3 }
 0x165   :  { %v141_v5 = vadd.f32 %v134_v4, %v101_v41 }
 0x166   :  { %v248_v6 = vpop.eup %247 }
 0x167   :  { %v250_v7 = vpop.eup %249  ;;  %v145_v8 = vsel %vm125_vm13, %v141_v5, -1e+30  ;;  %v136_v9 = vmul.f32 0.6931472, %v248_v6 }
 0x168   :  { %v149_v10 = vsub.f32 %v145_v8, %v363_v17  ;;  %v138_v11 = vmul.f32 0.6931472, %v250_v7 }
 0x169   :  { %v142_v12 = vadd.f32 %v136_v9, %v102_v49 }
 0x16a   :  { %v252_v13 = vpop.eup %251  ;;  %v157_v14 = vand.u32 2147483647, %v149_v10  ;;  %v143_v15 = vadd.f32 %v138_v11, %v103_v42  ;;  %v153_v48 = vmax.f32 %v149_v10, 0.0 }
 0x16b   :  { %v146_v16 = vsel %vm126_vm14, %v142_v12, -1e+30  ;;  %v140_v19 = vmul.f32 0.6931472, %v252_v13  ;;  %v210_v13 = vld [vmem:[#allocation7] sm:$0x1] }
 0x16c   :  { %v161_v20 = vsub.f32 0.0, %v157_v14  ;;  %v150_v21 = vsub.f32 %v146_v16, %v367_v28  ;;  %v147_v22 = vsel %vm127_vm15, %v143_v15, -1e+30 }
 0x16d   :  { %v151_v23 = vsub.f32 %v147_v22, %v365_v18  ;;  %v144_v24 = vadd.f32 %v140_v19, %v104_v51 }
 0x16e   :  { %v165_v25 = vmul.f32 1.442695, %v161_v20  ;;  %v158_v26 = vand.u32 2147483647, %v150_v21  ;;  %v154_v54 = vmax.f32 %v150_v21, 0.0 }
 0x16f   :  { %v159_v27 = vand.u32 2147483647, %v151_v23  ;;  %v148_v17 = vsel %vm128_vm0, %v144_v24, -1e+30  ;;  %v155_v56 = vmax.f32 %v151_v23, 0.0 }
 0x170   :  { %253 = vpow2.f32 %v165_v25  ;;  %v162_v30 = vsub.f32 0.0, %v158_v26  ;;  %v152_v34 = vsub.f32 %v148_v17, %v369_v29 }
 0x171   :  { %v163_v35 = vsub.f32 0.0, %v159_v27 }
 0x172   :  { %v167_v37 = vmul.f32 1.442695, %v162_v30  ;;  %v160_v38 = vand.u32 2147483647, %v152_v34  ;;  %v156_v62 = vmax.f32 %v152_v34, 0.0 }
 0x173   :  { %v169_v39 = vmul.f32 1.442695, %v163_v35 }
 0x174   :  { %255 = vpow2.f32 %v167_v37  ;;  %v164_v28 = vsub.f32 0.0, %v160_v38 }
 0x175   :  { %257 = vpow2.f32 %v169_v39 }
 0x176   :  { %v171_v40 = vmul.f32 1.442695, %v164_v28 }
 0x178   :  { %259 = vpow2.f32 %v171_v40 }
 0x17d   :  { %v254_v18 = vpop.eup %253 }
 0x17e   :  { %v173_v41 = vadd.f32 1.0, %v254_v18 }
 0x180   :  { %261 = vlog2.f32 %v173_v41 }
 0x181   :  { %v256_v42 = vpop.eup %255 }
 0x182   :  { %v258_v43 = vpop.eup %257  ;;  %v174_v44 = vadd.f32 1.0, %v256_v42 }
 0x183   :  { %v175_v45 = vadd.f32 1.0, %v258_v43 }
 0x184   :  { %263 = vlog2.f32 %v174_v44 }
 0x185   :  { %v260_v46 = vpop.eup %259  ;;  %265 = vlog2.f32 %v175_v45 }
 0x186   :  { %v176_v29 = vadd.f32 1.0, %v260_v46 }
 0x188   :  { %267 = vlog2.f32 %v176_v29 }
 0x18d   :  { %v262_v47 = vpop.eup %261 }
 0x18e   :  { %v178_v49 = vmul.f32 0.6931472, %v262_v47 }
 0x190   :  { %v185_v50 = vadd.f32 %v178_v49, %v153_v48 }
 0x191   :  { %v264_v51 = vpop.eup %263 }
 0x192   :  { %v266_v52 = vpop.eup %265  ;;  %v189_v53 = vsel %vm371_vm5, %v185_v50, 0.0  ;;  %v180_v55 = vmul.f32 0.6931472, %v264_v51 }
 0x193   :  { %193 = vadd.xlane.f32.xlu0 %v189_v53  ;;  %v182_v57 = vmul.f32 0.6931472, %v266_v52 }
 0x194   :  { %v186_v58 = vadd.f32 %v180_v55, %v154_v54 }
 0x195   :  { %v268_v59 = vpop.eup %267  ;;  %v187_v60 = vadd.f32 %v182_v57, %v155_v56 }
 0x196   :  { %v190_v61 = vsel %vm379_vm7, %v186_v58, 0.0  ;;  %v184_v63 = vmul.f32 0.6931472, %v268_v59 }
 0x197   :  { %195 = vadd.xlane.f32.xlu1 %v190_v61  ;;  %v191_v0 = vsel %vm375_vm6, %v187_v60, 0.0 }
 0x198   :  { %197 = vadd.xlane.f32.xlu0 %v191_v0  ;;  %v188_v31 = vadd.f32 %v184_v63, %v156_v62 }
 0x19a   :  { %v192_v1 = vsel %vm389_vm8, %v188_v31, 0.0 }
 0x19b   :  { %199 = vadd.xlane.f32.xlu1 %v192_v1 }
 0x21c   :  { %v194_v3 = vpop.xlane.xlu0 %193 }
 0x220   :  { %v196_v4 = vpop.xlane.xlu1 %195 }
 0x221   :  { %v201_v33 = vadd.f32 %v196_v4, %v194_v3  ;;  %v198_v5 = vpop.xlane.xlu0 %197 }
 0x223   :  { %v202_v6 = vadd.f32 %v201_v33, %v198_v5 }
 0x224   :  { %v200_v7 = vpop.xlane.xlu1 %199 }
 0x225   :  { %v203_v8 = vadd.f32 %v202_v6, %v200_v7 }
 0x227   :  { %v204_v9 = vrot.slane %v203_v8, 4 }
 0x229   :  { %v205_v32 = vadd.f32 %v204_v9, %v203_v8 }
 0x22b   :  { %v206_v10 = vrot.slane %v205_v32, 2 }
 0x22d   :  { %v207_v11 = vadd.f32 %v206_v10, %v205_v32 }
 0x22f   :  { %v208_v12 = vrot.slane %v207_v11, 1 }
 0x231   :  { %v209_v36 = vadd.f32 %v208_v12, %v207_v11 }
 0x233   :  { %v211_v14 = vadd.f32 %v210_v13, %v209_v36 }
 0x235   :  { %213 = vst.msk [vmem:[#allocation7] sm:$0x1] %vm44_vm1, %v211_v14 }
 0x236   :  { %320 = shalt.err (!%p317_p0)
}
 0x237   :  { %223 = dma.vmem_to_hbm [thread:$0]  %s221_s1, 16, %s426_s2, [#allocation4]  }
 0x238   :  { %333 = dma.done.wait [#allocation4], 16  }
 0x239   :  { %334 = vsyncadd [#allocation4], 4294967280 }
 0x23a   :  { %227 = vsyncpa [#allocation3], 1 }
 0x23b   :  { %228 = vsyncpa [#allocation6], 1 }
 0x23c   :  { %229 = vsyncpa [#allocation4], 1 }

</bundles_post_ra>
